<compile_context>
chip_gen: v7x
topology: tpu7x:2x2x1
jax: 0.10.0
libtpu: 0.0.40
codegen_flags: <defaults>
</compile_context>

<pallas_src>
import jax
import jax.numpy as jnp
from jax.experimental import pallas as pl
from jax.experimental.pallas import tpu as pltpu


def _round_up(x, m):
    return (x + m - 1) // m * m


def _mlp_kernel(a_ref, b_ref, w1a_ref, w1b_ref, b1_ref, w2_ref, b2_ref,
                w3_ref, b3_ref, o_ref):
    # fc1 over the virtual concat [protA | protB]: two MXU dots (bf16 inputs,
    # f32 accumulation) summed on the VPU -- no materialized concat slab.
    a = a_ref[...].astype(jnp.bfloat16)
    b = b_ref[...].astype(jnp.bfloat16)
    h = jnp.dot(a, w1a_ref[...], preferred_element_type=jnp.float32)
    h = h + jnp.dot(b, w1b_ref[...], preferred_element_type=jnp.float32)
    h = jnp.maximum(h + b1_ref[...], 0.0)     # ReLU (dropout = identity, eval)
    # fc2 + ReLU
    h = jnp.dot(h.astype(jnp.bfloat16), w2_ref[...],
                preferred_element_type=jnp.float32)
    h = jnp.maximum(h + b2_ref[...], 0.0)
    # fc3: (TM,Hp) @ (Hp,1) keeps the MXU streaming M=TM rows (no XLU
    # transpose of the full h tile); the (TM,1) store per tile is tiny.
    col = jnp.dot(h.astype(jnp.bfloat16), w3_ref[...],
                  preferred_element_type=jnp.float32)
    o_ref[...] = col + b3_ref[0]              # scalar bias from SMEM


def prepare_params(params, *, hid_align=128):
    """One-time weight prep (call at load time, reuse every forward).

    bf16 cast for the MXU, fc1 weight split into the protA / protB halves,
    and zero padding of the hidden dim to a multiple of `hid_align`
    (mathematically exact: zero cols -> ReLU(0+0)=0 -> zero contribution).
    """
    w1, b1, w2, b2, w3, b3 = params
    twoP, H = w1.shape
    P = twoP // 2
    Hp = _round_up(max(H, hid_align), hid_align)
    ph = Hp - H
    return dict(
        P=P, H=H, Hp=Hp,
        w1a=jnp.pad(w1[:P], ((0, 0), (0, ph))).astype(jnp.bfloat16),
        w1b=jnp.pad(w1[P:], ((0, 0), (0, ph))).astype(jnp.bfloat16),
        b1=jnp.pad(b1, (0, ph)).reshape(1, Hp).astype(jnp.float32),
        w2=jnp.pad(w2, ((0, ph), (0, ph))).astype(jnp.bfloat16),
        b2=jnp.pad(b2, (0, ph)).reshape(1, Hp).astype(jnp.float32),
        w3=jnp.pad(w3.reshape(H, 1), ((0, ph), (0, 0))).astype(jnp.bfloat16),
        b3=b3.reshape(1).astype(jnp.float32),
    )


def net_forward(protAs, protBs, prep, *, block_b=512):
    """Pallas implementation of Net.forward. Returns logits of shape [B, 1]."""
    P, Hp = prep["P"], prep["Hp"]
    B = protAs.shape[0]
    assert protAs.shape == (B, P) and protBs.shape == (B, P)
    act_bytes = jnp.dtype(protAs.dtype).itemsize

    # Batch tiling: full batch if small, otherwise block_b-row tiles.
    TM = B if B <= block_b else block_b

    def vmem_bytes(tm):
        resident = (2 * P * Hp + Hp * Hp + Hp) * 2 + 2 * Hp * 4 + 4   # bf16 w + f32 b
        per_step = 2 * (2 * tm * P * act_bytes + tm * 4)              # 2x-buffered IO
        working = 2 * tm * Hp * 4                                     # h intermediates
        return resident + per_step + working

    # v7x-safe: keep the working set (and the scoped request) well under 64 MiB.
    while vmem_bytes(TM) > 36 * 1024 * 1024 and TM > 128:
        TM = max(128, TM // 2)
    num_tiles = pl.cdiv(B, TM)
    Bp = num_tiles * TM
    if Bp != B:
        pad = ((0, Bp - B), (0, 0))
        protAs = jnp.pad(protAs, pad)
        protBs = jnp.pad(protBs, pad)

    vmem_limit = int(min(40 * 1024 * 1024,
                         max(16 * 1024 * 1024, 2 * vmem_bytes(TM))))

    # Split batch tiles across v7x's two TensorCores; plain "parallel" elsewhere.
    batch_sem = "parallel"
    try:
        if num_tiles >= 2 and "v7" in jax.devices()[0].device_kind.lower():
            batch_sem = pltpu.CORE_PARALLEL
    except Exception:
        pass

    out = pl.pallas_call(
        _mlp_kernel,
        out_shape=jax.ShapeDtypeStruct((Bp, 1), jnp.float32),
        grid=(num_tiles,),
        in_specs=[
            pl.BlockSpec((TM, P), lambda i: (i, 0)),             # protA tile
            pl.BlockSpec((TM, P), lambda i: (i, 0)),             # protB tile
            pl.BlockSpec((P, Hp), lambda i: (0, 0)),             # w1[:P] (resident)
            pl.BlockSpec((P, Hp), lambda i: (0, 0)),             # w1[P:] (resident)
            pl.BlockSpec((1, Hp), lambda i: (0, 0)),             # b1
            pl.BlockSpec((Hp, Hp), lambda i: (0, 0)),            # w2
            pl.BlockSpec((1, Hp), lambda i: (0, 0)),             # b2
            pl.BlockSpec((Hp, 1), lambda i: (0, 0)),             # w3 column
            pl.BlockSpec(memory_space=pltpu.MemorySpace.SMEM),   # b3 scalar
        ],
        out_specs=pl.BlockSpec((TM, 1), lambda i: (i, 0)),
        compiler_params=pltpu.CompilerParams(
            dimension_semantics=(batch_sem,),
            vmem_limit_bytes=vmem_limit),
    )(protAs, protBs, prep["w1a"], prep["w1b"], prep["b1"], prep["w2"],
      prep["b2"], prep["w3"], prep["b3"])

    return out[:B]


def init_params(key, protein_dim, hid_dim):
    """Deterministic parameter init. Weights stored as [in, out] (f32)."""
    k1, k2, k3, k4, k5, k6 = jax.random.split(key, 6)
    s1 = 1.0 / jnp.sqrt(2.0 * protein_dim)
    s2 = 1.0 / jnp.sqrt(float(hid_dim))
    w1 = jax.random.uniform(k1, (2 * protein_dim, hid_dim), jnp.float32, -s1, s1)
    b1 = jax.random.uniform(k2, (hid_dim,), jnp.float32, -s1, s1)
    w2 = jax.random.uniform(k3, (hid_dim, hid_dim), jnp.float32, -s2, s2)
    b2 = jax.random.uniform(k4, (hid_dim,), jnp.float32, -s2, s2)
    w3 = jax.random.uniform(k5, (hid_dim, 1), jnp.float32, -s2, s2)
    b3 = jax.random.uniform(k6, (1,), jnp.float32, -s2, s2)
    return (w1, b1, w2, b2, w3, b3)


if __name__ == "__main__":
    protein_dim = 32
    hid_dim = 32
    batch = 8

    key = jax.random.PRNGKey(0)
    kA, kB, kP = jax.random.split(key, 3)
    protAs = jax.random.normal(kA, (batch, protein_dim), jnp.float32)
    protBs = jax.random.normal(kB, (batch, protein_dim), jnp.float32)
    params = init_params(kP, protein_dim, hid_dim)

    prep = prepare_params(params)          # one-time weight prep (cached)
    logits = net_forward(protAs, protBs, prep)
    jax.block_until_ready(logits)

    # sanity check against plain-JAX f32 reference
    w1, b1, w2, b2, w3, b3 = params
    x = jnp.concatenate([protAs, protBs], axis=1)
    h = jnp.maximum(x @ w1 + b1, 0.0)
    h = jnp.maximum(h @ w2 + b2, 0.0)
    ref = h @ w3 + b3
    assert logits.shape == (batch, 1)
    # bf16 matmul inputs with f32 accumulation -> loosened tolerance vs f32 ref
    assert jnp.allclose(logits, ref, atol=5e-2, rtol=5e-2), (
        float(jnp.max(jnp.abs(logits - ref))))

    print("KERNEL_OK")
</pallas_src>

<mosaic_0001>
module attributes {stable_mosaic.version = 11 : i64} {
  func.func @_mlp_kernel(%arg0: i32, %arg1: memref<8x32xf32, #tpu.memory_space<vmem>>, %arg2: memref<8x32xf32, #tpu.memory_space<vmem>>, %arg3: memref<32x128xbf16, #tpu.memory_space<vmem>>, %arg4: memref<32x128xbf16, #tpu.memory_space<vmem>>, %arg5: memref<1x128xf32, #tpu.memory_space<vmem>>, %arg6: memref<128x128xbf16, #tpu.memory_space<vmem>>, %arg7: memref<1x128xf32, #tpu.memory_space<vmem>>, %arg8: memref<128x1xbf16, #tpu.memory_space<vmem>>, %arg9: memref<1xf32, #tpu.memory_space<smem>>, %arg10: memref<8x1xf32, #tpu.memory_space<vmem>>) attributes {dimension_semantics = [#tpu.dimension_semantics<parallel>], iteration_bounds = array<i64: 1>, scalar_prefetch = 0 : i64, scratch_operands = 0 : i64, tpu.core_type = #tpu.core_type<tc>, window_params = [{transform_indices = @transform_0, window_bounds = array<i64: 8, 32>}, {transform_indices = @transform_1, window_bounds = array<i64: 8, 32>}, {pipeline_mode = #tpu.pipeline_mode<synchronous>, transform_indices = @transform_2, window_bounds = array<i64: 32, 128>}, {pipeline_mode = #tpu.pipeline_mode<synchronous>, transform_indices = @transform_3, window_bounds = array<i64: 32, 128>}, {pipeline_mode = #tpu.pipeline_mode<synchronous>, transform_indices = @transform_4, window_bounds = array<i64: 1, 128>}, {pipeline_mode = #tpu.pipeline_mode<synchronous>, transform_indices = @transform_5, window_bounds = array<i64: 128, 128>}, {pipeline_mode = #tpu.pipeline_mode<synchronous>, transform_indices = @transform_6, window_bounds = array<i64: 1, 128>}, {pipeline_mode = #tpu.pipeline_mode<synchronous>, transform_indices = @transform_7, window_bounds = array<i64: 128, 1>}, {transform_indices = @transform_8, window_bounds = array<i64: 1>}, {transform_indices = @transform_9, window_bounds = array<i64: 8, 1>}]} {
    %c0 = arith.constant 0 : index
    %c0_0 = arith.constant 0 : index
    %0 = vector.load %arg1[%c0, %c0_0] : memref<8x32xf32, #tpu.memory_space<vmem>>, vector<8x32xf32>
    %1 = arith.truncf %0 : vector<8x32xf32> to vector<8x32xbf16>
    %c0_1 = arith.constant 0 : index
    %c0_2 = arith.constant 0 : index
    %2 = vector.load %arg2[%c0_1, %c0_2] : memref<8x32xf32, #tpu.memory_space<vmem>>, vector<8x32xf32>
    %3 = arith.truncf %2 : vector<8x32xf32> to vector<8x32xbf16>
    %c0_3 = arith.constant 0 : index
    %c0_4 = arith.constant 0 : index
    %4 = vector.load %arg3[%c0_3, %c0_4] : memref<32x128xbf16, #tpu.memory_space<vmem>>, vector<32x128xbf16>
    %cst = arith.constant dense<0.000000e+00> : vector<8x128xf32>
    %5 = tpu.matmul %1, %4, %cst {dimension_numbers = #tpu.dot_dimension_numbers<[1], [0], [0], [1], [0, 0, 1, 1], [], []>} : vector<8x32xbf16>, vector<32x128xbf16>, vector<8x128xf32> -> vector<8x128xf32>
    %c0_5 = arith.constant 0 : index
    %c0_6 = arith.constant 0 : index
    %6 = vector.load %arg4[%c0_5, %c0_6] : memref<32x128xbf16, #tpu.memory_space<vmem>>, vector<32x128xbf16>
    %cst_7 = arith.constant dense<0.000000e+00> : vector<8x128xf32>
    %7 = tpu.matmul %3, %6, %cst_7 {dimension_numbers = #tpu.dot_dimension_numbers<[1], [0], [0], [1], [0, 0, 1, 1], [], []>} : vector<8x32xbf16>, vector<32x128xbf16>, vector<8x128xf32> -> vector<8x128xf32>
    %8 = arith.addf %5, %7 : vector<8x128xf32>
    %c0_8 = arith.constant 0 : index
    %c0_9 = arith.constant 0 : index
    %9 = vector.load %arg5[%c0_8, %c0_9] : memref<1x128xf32, #tpu.memory_space<vmem>>, vector<1x128xf32>
    %10 = vector.broadcast %9 : vector<1x128xf32> to vector<8x128xf32>
    %11 = arith.addf %8, %10 : vector<8x128xf32>
    %cst_10 = arith.constant 0.000000e+00 : f32
    %12 = vector.broadcast %cst_10 : f32 to vector<8x128xf32>
    %13 = arith.maximumf %11, %12 : vector<8x128xf32>
    %14 = arith.truncf %13 : vector<8x128xf32> to vector<8x128xbf16>
    %c0_11 = arith.constant 0 : index
    %c0_12 = arith.constant 0 : index
    %15 = vector.load %arg6[%c0_11, %c0_12] : memref<128x128xbf16, #tpu.memory_space<vmem>>, vector<128x128xbf16>
    %cst_13 = arith.constant dense<0.000000e+00> : vector<8x128xf32>
    %16 = tpu.matmul %14, %15, %cst_13 {dimension_numbers = #tpu.dot_dimension_numbers<[1], [0], [0], [1], [0, 0, 1, 1], [], []>} : vector<8x128xbf16>, vector<128x128xbf16>, vector<8x128xf32> -> vector<8x128xf32>
    %c0_14 = arith.constant 0 : index
    %c0_15 = arith.constant 0 : index
    %17 = vector.load %arg7[%c0_14, %c0_15] : memref<1x128xf32, #tpu.memory_space<vmem>>, vector<1x128xf32>
    %18 = vector.broadcast %17 : vector<1x128xf32> to vector<8x128xf32>
    %19 = arith.addf %16, %18 : vector<8x128xf32>
    %cst_16 = arith.constant 0.000000e+00 : f32
    %20 = vector.broadcast %cst_16 : f32 to vector<8x128xf32>
    %21 = arith.maximumf %19, %20 : vector<8x128xf32>
    %22 = arith.truncf %21 : vector<8x128xf32> to vector<8x128xbf16>
    %c0_17 = arith.constant 0 : index
    %c0_18 = arith.constant 0 : index
    %23 = vector.load %arg8[%c0_17, %c0_18] : memref<128x1xbf16, #tpu.memory_space<vmem>>, vector<128x1xbf16>
    %cst_19 = arith.constant dense<0.000000e+00> : vector<8x1xf32>
    %24 = tpu.matmul %22, %23, %cst_19 {dimension_numbers = #tpu.dot_dimension_numbers<[1], [0], [0], [1], [0, 0, 1, 1], [], []>} : vector<8x128xbf16>, vector<128x1xbf16>, vector<8x1xf32> -> vector<8x1xf32>
    %c0_20 = arith.constant 0 : index
    %25 = memref.load %arg9[%c0_20] : memref<1xf32, #tpu.memory_space<smem>>
    %26 = vector.broadcast %25 : f32 to vector<8x1xf32>
    %27 = arith.addf %24, %26 : vector<8x1xf32>
    %c0_21 = arith.constant 0 : index
    %c0_22 = arith.constant 0 : index
    %28 = vector.load %arg10[%c0_21, %c0_22] : memref<8x1xf32, #tpu.memory_space<vmem>>, vector<8x1xf32>
    tpu.vector_store %arg10[%c0_21, %c0_22], %27 {strides = array<i32>} : memref<8x1xf32, #tpu.memory_space<vmem>>, vector<8x1xf32>,
    return
  }
  func.func @transform_0(%arg0: i32) -> (i32, i32) {
    %c0_i32 = arith.constant 0 : i32
    %c0_i32_0 = arith.constant 0 : i32
    return %arg0, %c0_i32 : i32, i32
  }
  func.func @transform_1(%arg0: i32) -> (i32, i32) {
    %c0_i32 = arith.constant 0 : i32
    %c0_i32_0 = arith.constant 0 : i32
    return %arg0, %c0_i32 : i32, i32
  }
  func.func @transform_2(%arg0: i32) -> (i32, i32) {
    %c0_i32 = arith.constant 0 : i32
    %c0_i32_0 = arith.constant 0 : i32
    %c0_i32_1 = arith.constant 0 : i32
    return %c0_i32, %c0_i32_0 : i32, i32
  }
  func.func @transform_3(%arg0: i32) -> (i32, i32) {
    %c0_i32 = arith.constant 0 : i32
    %c0_i32_0 = arith.constant 0 : i32
    %c0_i32_1 = arith.constant 0 : i32
    return %c0_i32, %c0_i32_0 : i32, i32
  }
  func.func @transform_4(%arg0: i32) -> (i32, i32) {
    %c0_i32 = arith.constant 0 : i32
    %c0_i32_0 = arith.constant 0 : i32
    %c0_i32_1 = arith.constant 0 : i32
    return %c0_i32, %c0_i32_0 : i32, i32
  }
  func.func @transform_5(%arg0: i32) -> (i32, i32) {
    %c0_i32 = arith.constant 0 : i32
    %c0_i32_0 = arith.constant 0 : i32
    %c0_i32_1 = arith.constant 0 : i32
    return %c0_i32, %c0_i32_0 : i32, i32
  }
  func.func @transform_6(%arg0: i32) -> (i32, i32) {
    %c0_i32 = arith.constant 0 : i32
    %c0_i32_0 = arith.constant 0 : i32
    %c0_i32_1 = arith.constant 0 : i32
    return %c0_i32, %c0_i32_0 : i32, i32
  }
  func.func @transform_7(%arg0: i32) -> (i32, i32) {
    %c0_i32 = arith.constant 0 : i32
    %c0_i32_0 = arith.constant 0 : i32
    %c0_i32_1 = arith.constant 0 : i32
    return %c0_i32, %c0_i32_0 : i32, i32
  }
  func.func @transform_8(%arg0: i32) -> i32 {
    %c0_i32 = arith.constant 0 : i32
    %c0_i32_0 = arith.constant 0 : i32
    return %c0_i32 : i32
  }
  func.func @transform_9(%arg0: i32) -> (i32, i32) {
    %c0_i32 = arith.constant 0 : i32
    %c0_i32_0 = arith.constant 0 : i32
    return %arg0, %c0_i32 : i32, i32
  }
}

</mosaic_0001>

<bundles_post_ra>
// kernel: tpu_custom_call.1
= control target key start
LH: loop header
LB: loop body
LE: loop exit
PB: predicated region body
PF: predicated region fallthrough
CT: control target
= control target key end

     0   :  { %15 = vsyncpa [#allocation4], 0  ;;  %s819_s0 = inlined_call_operand.hbm [shape: f32[8,32], index: 0, kind: input, shape index: {}]   ;;  %s820_s1 = inlined_call_operand.hbm [shape: f32[8,32], index: 1, kind: input, shape index: {}]   ;;  %s821_s2 = inlined_call_operand.vmem [shape: bf16[32,128], index: 2, kind: input, shape index: {}]   ;;  %s822_s3 = inlined_call_operand.hbm [shape: bf16[32,128], index: 3, kind: input, shape index: {}]   ;;  %s823_s4 = inlined_call_operand.vmem [shape: f32[1,128], index: 4, kind: input, shape index: {}]   ;;  %s824_s5 = inlined_call_operand.vmem [shape: bf16[128,128], index: 5, kind: input, shape index: {}]   ;;  %s825_s6 = inlined_call_operand.vmem [shape: f32[1,128], index: 6, kind: input, shape index: {}]   ;;  %s826_s7 = inlined_call_operand.vmem [shape: bf16[128,1], index: 7, kind: input, shape index: {}]   ;;  %s827_s8 = inlined_call_operand.<no memory space> [shape: f32[1], index: 8, kind: input, shape index: {}]   ;;  %s828_s9 = inlined_call_operand.vmem [shape: f32[8,1], index: 9, kind: output, shape index: {}]  }
   0x1   :  { %16 = vsyncpa [#allocation6], 0  ;;  %s632_s30 = smov [#allocation5]   ;;  %s633_s11 = smov [#allocation3]  }
   0x2   :  { %s33_s10 = sshll.u32 %s632_s30, 4  ;;  %s23_s12 = sshll.u32 %s633_s11, 4  ;;  %s34_s10 = int_to_ptr.vmem [resolvable:$true] %s33_s10  ;;  %s24_s12 = int_to_ptr.vmem [resolvable:$true] %s23_s12 }
   0x3   :  { %s562_s15 = scalar_lea.hbm %s820_s1, 128 }
   0x4   :  { %p563_p0 = scmp.ne.s32.totalorder %s820_s1, %s562_s15  ;;  %p566_p1 = scmp.lt.u32.totalorder %s562_s15, %s820_s1 }
   0x6   :  { %p568_p2 = pnand %p566_p1, %p563_p0 }
   0x8   :  { %571 = shalt.err (!%p568_p2)
}
   0x9   :  { %s572_s20 = scalar_lea.vmem %s34_s10, 128  ;;  %p577_p4 = scmp.lt.s32.totalorder %s34_s10, %s34_s10 }
   0xa   :  { %p573_p3 = scmp.ne.s32.totalorder %s34_s10, %s572_s20  ;;  %p578_p5 = scmp.lt.s32.totalorder %s572_s20, %s572_s20 }
   0xc   :  { %p579_p6 = por %p578_p5, %p577_p4 }
   0xe   :  { %p580_p7 = pnand %p579_p6, %p573_p3 }
  0x10   :  { %583 = shalt.err (!%p580_p7)
}
  0x11   :  { %36 = dma.hbm_to_vmem [thread:$0]  %s820_s1, 128, %s34_s10, [#allocation6]  }
  0x12   :  { %s584_s25 = scalar_lea.hbm %s819_s0, 128 }
  0x13   :  { %p585_p8 = scmp.ne.s32.totalorder %s819_s0, %s584_s25  ;;  %p588_p9 = scmp.lt.u32.totalorder %s584_s25, %s819_s0 }
  0x15   :  { %p590_p10 = pnand %p588_p9, %p585_p8 }
  0x17   :  { %593 = shalt.err (!%p590_p10)
}
  0x18   :  { %s594_s30 = scalar_lea.vmem %s24_s12, 128  ;;  %p599_p12 = scmp.lt.s32.totalorder %s24_s12, %s24_s12 }
  0x19   :  { %p595_p11 = scmp.ne.s32.totalorder %s24_s12, %s594_s30  ;;  %p600_p13 = scmp.lt.s32.totalorder %s594_s30, %s594_s30 }
  0x1b   :  { %p601_p0 = por %p600_p13, %p599_p12 }
  0x1d   :  { %p602_p1 = pnand %p601_p0, %p595_p11 }
  0x1f   :  { %605 = shalt.err (!%p602_p1)
}
  0x20   :  { %26 = dma.hbm_to_vmem [thread:$0]  %s819_s0, 128, %s24_s12, [#allocation4]  }
  0x21   :  { %s634_s11 = smov [#allocation7]   ;;  %s606_s16 = scalar_lea.hbm %s822_s3, 256 }
  0x22   :  { %s44_s13 = sshll.u32 %s634_s11, 4  ;;  %p607_p2 = scmp.ne.s32.totalorder %s822_s3, %s606_s16  ;;  %s45_s13 = int_to_ptr.vmem [resolvable:$true] %s44_s13 }
  0x23   :  { %p610_p3 = scmp.lt.u32.totalorder %s606_s16, %s822_s3 }
  0x25   :  { %p612_p4 = pnand %p610_p3, %p607_p2 }
  0x27   :  { %615 = shalt.err (!%p612_p4)
}
  0x28   :  { %s616_s21 = scalar_lea.vmem %s45_s13, 256  ;;  %p621_p6 = scmp.lt.s32.totalorder %s45_s13, %s45_s13 }
  0x29   :  { %p617_p5 = scmp.ne.s32.totalorder %s45_s13, %s616_s21  ;;  %p622_p7 = scmp.lt.s32.totalorder %s616_s21, %s616_s21 }
  0x2b   :  { %p623_p8 = por %p622_p7, %p621_p6 }
  0x2d   :  { %p624_p9 = pnand %p623_p8, %p617_p5 }
  0x2f   :  { %627 = shalt.err (!%p624_p9)
}
  0x30   :  { %s635_s0 = smov 64   ;;  %s636_s12 = smov 4  }
  0x31   :  { %50 = dma.hbm_to_vmem [thread:$0]  %s822_s3, 256, %s45_s13, [#allocation6], %s635_s0, %s635_s0, %s636_s12  }
  0x32   :  { %628 = dma.done.wait [#allocation4], 128  }
  0x33   :  { %629 = vsyncadd [#allocation4], 4294967168 }
  0x34   :  { %630 = dma.done.wait [#allocation6], 384  }
  0x35   :  { %631 = vsyncadd [#allocation6], 4294966912  ;;  %v637_v0 = vmov 0.0   ;;  %vm638_vm0 = vmmov 0   ;;  %v542_v1 = vld [vmem:[#allocation7] sm:$0xff]   ;;  %v543_v2 = vld [vmem:[%s821_s2] sm:$0xff]   ;;  %v334_v46 = vstv %s827_s8 }
  0x36   :  { %479 = vmatprep.subr.bf16.mxu0 %v637_v0  ;;  %487 = vmatprep.subr.bf16.mxu1 %v637_v0  ;;  %v544_v3 = vld [vmem:[#allocation7 + $0x8] sm:$0xff]   ;;  %v545_v4 = vld [vmem:[%s821_s2 + $0x8] sm:$0xff]   ;;  %v71_v6 = vld [vmem:[#allocation3] sm:$0xff]  ;;  %vm95_vm1 = vcmask 261120   ;;  %vm423_vm2 = vcmask 7168  }
  0x37   :  { %483 = vmatprep.mubr.msk.bf16.mxu0 %vm638_vm0, %v637_v0  ;;  %491 = vmatprep.mubr.msk.bf16.mxu1 %vm638_vm0, %v637_v0  ;;  %v73_v5 = vld [vmem:[#allocation5] sm:$0xff]  ;;  %v72_v8 = vpack.c.bf16 %v71_v6, %v71_v6  ;;  %v546_v9 = vld [vmem:[%s824_s5] sm:$0xff]   ;;  %v548_v11 = vld [vmem:[%s824_s5 + $0x10] sm:$0xff]  }
  0x38   :  { %480 = vmatpush3.bf16.msra.mxu0 %v542_v1  ;;  %488 = vmatpush3.bf16.msra.mxu1 %v543_v2  ;;  %v74_v7 = vpack.c.bf16 %v73_v5, %v73_v5  ;;  %v547_v10 = vld [vmem:[%s824_s5 + $0x8] sm:$0xff]   ;;  %v549_v12 = vld [vmem:[%s824_s5 + $0x18] sm:$0xff]   ;;  %v550_v13 = vld [vmem:[%s824_s5 + $0x20] sm:$0xff]  }
  0x39   :  { %481 = vmatprep.subr.bf16.mxu0 %v637_v0  ;;  %489 = vmatprep.subr.bf16.mxu1 %v637_v0  ;;  %v551_v14 = vld [vmem:[%s824_s5 + $0x28] sm:$0xff]   ;;  %v552_v15 = vld [vmem:[%s824_s5 + $0x30] sm:$0xff]   ;;  %v553_v16 = vld [vmem:[%s824_s5 + $0x38] sm:$0xff]  }
  0x3a   :  { %v554_v17 = vld [vmem:[%s826_s7] sm:$0xff]   ;;  %v555_v18 = vld [vmem:[%s826_s7 + $0x8] sm:$0xff]   ;;  %v556_v19 = vld [vmem:[%s826_s7 + $0x10] sm:$0xff]  }
  0x3b   :  { %v557_v20 = vld [vmem:[%s826_s7 + $0x18] sm:$0xff]   ;;  %v558_v21 = vld [vmem:[%s826_s7 + $0x20] sm:$0xff]   ;;  %v559_v22 = vld [vmem:[%s826_s7 + $0x28] sm:$0xff]  }
  0x3c   :  { %482 = vmatpush3.bf16.msra.mxu0 %v544_v3  ;;  %490 = vmatpush3.bf16.msra.mxu1 %v545_v4  ;;  %v437_v25 = vld [vmem:[%s823_s4] ss:$0 sm:$0xff]  ;;  %v560_v36 = vld [vmem:[%s826_s7 + $0x30] sm:$0xff]   ;;  %v561_v37 = vld [vmem:[%s826_s7 + $0x38] sm:$0xff]  }
  0x3d   :  { %495 = vmatprep.subr.bf16.mxu0 %v637_v0  ;;  %515 = vmatprep.subr.bf16.mxu1 %v637_v0  ;;  %v438_v38 = vld [vmem:[%s825_s6] ss:$0 sm:$0xff] }
  0x3f   :  { %484 = vmatmul.mubr.msk.bf16.vlgmr.msra.gmra.mrb[0].mxu0 %vm95_vm1, %v74_v7  ;;  %492 = vmatmul.mubr.msk.bf16.vlgmr.msra.gmra.mrb[0].mxu1 %vm95_vm1, %v72_v8 }
  0x40   :  { %496 = vmatpush3.bf16.msra.mxu0 %v546_v9  ;;  %511 = vmatprep.mubr.msk.bf16.mxu0 %vm638_vm0, %v637_v0 }
  0x41   :  { %497 = vmatprep.subr.bf16.mxu0 %v637_v0  ;;  %531 = vmatprep.mubr.msk.bf16.mxu1 %vm638_vm0, %v637_v0 }
  0x42   :  { %516 = vmatpush3.bf16.msra.mxu1 %v554_v17 }
  0x43   :  { %517 = vmatprep.subr.bf16.mxu1 %v637_v0 }
  0x44   :  { %498 = vmatpush3.bf16.msra.mxu0 %v547_v10 }
  0x45   :  { %499 = vmatprep.subr.bf16.mxu0 %v637_v0 }
  0x46   :  { %518 = vmatpush3.bf16.msra.mxu1 %v555_v18 }
  0x47   :  { %519 = vmatprep.subr.bf16.mxu1 %v637_v0 }
  0x48   :  { %500 = vmatpush3.bf16.msra.mxu0 %v548_v11 }
  0x49   :  { %501 = vmatprep.subr.bf16.mxu0 %v637_v0 }
  0x4a   :  { %520 = vmatpush3.bf16.msra.mxu1 %v556_v19 }
  0x4b   :  { %521 = vmatprep.subr.bf16.mxu1 %v637_v0 }
  0x4c   :  { %502 = vmatpush3.bf16.msra.mxu0 %v549_v12 }
  0x4d   :  { %503 = vmatprep.subr.bf16.mxu0 %v637_v0 }
  0x4e   :  { %522 = vmatpush3.bf16.msra.mxu1 %v557_v20 }
  0x4f   :  { %523 = vmatprep.subr.bf16.mxu1 %v637_v0 }
  0x50   :  { %504 = vmatpush3.bf16.msra.mxu0 %v550_v13 }
  0x51   :  { %505 = vmatprep.subr.bf16.mxu0 %v637_v0 }
  0x52   :  { %524 = vmatpush3.bf16.msra.mxu1 %v558_v21 }
  0x53   :  { %525 = vmatprep.subr.bf16.mxu1 %v637_v0 }
  0x54   :  { %506 = vmatpush3.bf16.msra.mxu0 %v551_v14 }
  0x55   :  { %507 = vmatprep.subr.bf16.mxu0 %v637_v0 }
  0x56   :  { %526 = vmatpush3.bf16.msra.mxu1 %v559_v22 }
  0x57   :  { %527 = vmatprep.subr.bf16.mxu1 %v637_v0 }
  0x58   :  { %508 = vmatpush3.bf16.msra.mxu0 %v552_v15 }
  0x59   :  { %509 = vmatprep.subr.bf16.mxu0 %v637_v0 }
  0x5a   :  { %528 = vmatpush3.bf16.msra.mxu1 %v560_v36 }
  0x5b   :  { %529 = vmatprep.subr.bf16.mxu1 %v637_v0 }
  0x5c   :  { %510 = vmatpush3.bf16.msra.mxu0 %v553_v16 }
  0x5e   :  { %530 = vmatpush3.bf16.msra.mxu1 %v561_v37 }
 0x112   :  { %v133_v23 = vpop.f32.mrb[0].mxu0  ;;  %v188_v24 = vpop.f32.mrb[0].mxu1 }
 0x113   :  { %v485_v26 = vpop.f32.mrb[1].mxu0  ;;  %v189_v27 = vadd.f32 %v188_v24, %v133_v23  ;;  %v493_v28 = vpop.f32.mrb[1].mxu1 }
 0x114   :  { %v136_v29 = vpop.f32.mrb[2].mxu0  ;;  %v191_v30 = vpop.f32.mrb[2].mxu1 }
 0x115   :  { %v486_v31 = vpop.f32.mrb[3].mxu0  ;;  %v201_v32 = vadd.f32 %v437_v25, %v189_v27  ;;  %v494_v33 = vpop.f32.mrb[3].mxu1 }
 0x117   :  { %v202_v34 = vmax.f32 %v201_v32, 0.0 }
 0x119   :  { %v203_v35 = vpack.c.bf16 %v202_v34, %v202_v34 }
 0x11b   :  { %512 = vmatmul.mubr.bf16.vlgmr.msra.gmra.mrb[4].mxu0 %v203_v35 }
 0x1ee   :  { %v309_v39 = vpop.f32.mrb[4].mxu0 }
 0x1ef   :  { %v310_v40 = vadd.f32 %v438_v38, %v309_v39  ;;  %v513_v41 = vpop.f32.mrb[5].mxu0 }
 0x1f0   :  { %v312_v42 = vpop.f32.mrb[6].mxu0 }
 0x1f1   :  { %v315_v43 = vmax.f32 %v310_v40, 0.0  ;;  %v514_v44 = vpop.f32.mrb[7].mxu0 }
 0x1f3   :  { %v316_v45 = vpack.c.bf16 %v315_v43, %v315_v43 }
 0x1f5   :  { %532 = vmatmul.mubr.bf16.vlgmr.msra.gmra.mrb[4].mxu1 %v316_v45 }
 0x2c8   :  { %v417_v47 = vpop.f32.mrb[4].mxu1 }
 0x2c9   :  { %v418_v48 = vadd.f32 %v417_v47, %v334_v46  ;;  %v533_v49 = vpop.f32.mrb[5].mxu1 }
 0x2ca   :  { %v420_v50 = vpop.f32.mrb[6].mxu1 }
 0x2cb   :  { %424 = vst.msk [vmem:[%s828_s9] sm:$0xff] %vm423_vm2, %v418_v48  ;;  %v534_v51 = vpop.f32.mrb[7].mxu1 }
 0x2cc   :  { %429 = vsyncpa [#allocation4], 1 }
 0x2cd   :  { %430 = vsyncpa [#allocation6], 1 }

</bundles_post_ra>
